<compile_context>
chip_gen: v5e
topology: v5e:2x2
jax: 0.10.0
libtpu: 0.0.40
codegen_flags: <defaults>
</compile_context>

<pallas_src>
import functools

import jax
import jax.numpy as jnp
from jax.experimental import pallas as pl
from jax.experimental.pallas import tpu as pltpu


# ---------------------------------------------------------------------------
# Kernels
# ---------------------------------------------------------------------------
def _gem_kernel_traced_p(p_ref, x_ref, w_ref, o_ref, *, eps):
    # p_ref: (1,) learned exponent in SMEM
    # x_ref: (TN, L) tile in VMEM (lane-dense)
    # w_ref: (L, Lo) block-diagonal pooling matrix (entries 1/K), VMEM-resident
    # o_ref: (TN, Lo) output tile
    p = p_ref[0]
    x = jnp.maximum(x_ref[...].astype(jnp.float32), eps)       # clamp(min=eps)
    xp = jnp.power(x, p)                                        # x ** p (EUP)
    pooled = jnp.dot(xp, w_ref[...],                            # window mean on MXU
                     preferred_element_type=jnp.float32)
    o_ref[...] = jnp.power(pooled, 1.0 / p).astype(o_ref.dtype)


def _gem_kernel_static_p(x_ref, w_ref, o_ref, *, eps, p):
    # Same as above but p is a compile-time constant.
    x = jnp.maximum(x_ref[...].astype(jnp.float32), eps)
    if float(p) == float(int(p)) and 1 <= int(p) <= 8:
        # Integer exponent: pure VPU multiplies, no exp/log on the EUP.
        xp = x
        for _ in range(int(p) - 1):
            xp = xp * x
    else:
        xp = jnp.power(x, float(p))
    pooled = jnp.dot(xp, w_ref[...], preferred_element_type=jnp.float32)
    o_ref[...] = jnp.power(pooled, 1.0 / float(p)).astype(o_ref.dtype)


# ---------------------------------------------------------------------------
# Wrapper
# ---------------------------------------------------------------------------
def _pooling_matrix(l_eff, lo, k, dtype=jnp.float32):
    """Block-diagonal (l_eff, lo) matrix with entries 1/k: x @ W == windowed mean."""
    rows = jnp.arange(l_eff) // k
    cols = jnp.arange(lo)
    return (rows[:, None] == cols[None, :]).astype(dtype) / float(k)


def _choose_tile_rows(n, l_eff):
    """Rows per tile: ~4 MiB of f32 working set so double-buffered DMA + f32
    temporaries + output fit comfortably in the smallest VMEM (v7x: 64 MiB)."""
    target_bytes = 4 * 1024 * 1024
    tn = max(8, target_bytes // max(1, l_eff * 4))
    tn = min(tn, 1024)
    tn = max(8, (tn // 8) * 8)          # keep sublane-aligned blocks
    if tn >= n:
        return n                        # full-extent block is always legal
    return int(tn)


def gem_pallas(x, p, *, kernel_size=8, eps=1e-6):
    """GeM 1D pooling.

    x: (B, C, L) float array.
    p: either a (1,) array (traced, like nn.Parameter) or a Python scalar
       (static fast path, e.g. 3.0 -> x*x*x on the VPU).
    """
    B, C, L = x.shape
    K = int(kernel_size)
    Lo = L // K
    L_eff = Lo * K
    N = B * C

    x2 = x.reshape(N, L)
    if L_eff != L:
        # F.avg_pool1d silently drops the trailing remainder window.
        x2 = x2[:, :L_eff]

    w = _pooling_matrix(L_eff, Lo, K, jnp.float32)

    TN = _choose_tile_rows(N, L_eff)
    grid = (pl.cdiv(N, TN),)

    # Explicit scoped-VMEM budget (input/output double buffers + resident W
    # + f32 temporaries), capped at v7x's 64 MiB physical VMEM.
    in_bytes = TN * L_eff * x.dtype.itemsize
    out_bytes = TN * Lo * x.dtype.itemsize
    w_bytes = L_eff * Lo * 4
    f32_tmp = TN * L_eff * 4 * 2
    need = 2 * (in_bytes + out_bytes) + 2 * w_bytes + f32_tmp
    vmem_limit = int(min(64 << 20, max(32 << 20, 2 * need)))

    compiler_params = pltpu.CompilerParams(
        dimension_semantics=("parallel",),   # shard rows across TCs (v7x)
        vmem_limit_bytes=vmem_limit,
    )
    out_shape = jax.ShapeDtypeStruct((N, Lo), x.dtype)

    x_spec = pl.BlockSpec((TN, L_eff), lambda i: (i, 0))
    w_spec = pl.BlockSpec((L_eff, Lo), lambda i: (0, 0))   # constant -> DMA once
    o_spec = pl.BlockSpec((TN, Lo), lambda i: (i, 0))

    static_p = isinstance(p, (int, float))
    if static_p:
        out = pl.pallas_call(
            functools.partial(_gem_kernel_static_p, eps=eps, p=float(p)),
            out_shape=out_shape,
            grid_spec=pltpu.PrefetchScalarGridSpec(
                num_scalar_prefetch=0,
                grid=grid,
                in_specs=[x_spec, w_spec],
                out_specs=o_spec,
            ),
            compiler_params=compiler_params,
        )(x2, w)
    else:
        out = pl.pallas_call(
            functools.partial(_gem_kernel_traced_p, eps=eps),
            out_shape=out_shape,
            grid_spec=pltpu.PrefetchScalarGridSpec(
                num_scalar_prefetch=0,
                grid=grid,
                in_specs=[
                    pl.BlockSpec(memory_space=pltpu.MemorySpace.SMEM),  # p (1,)
                    x_spec,
                    w_spec,
                ],
                out_specs=o_spec,
            ),
            compiler_params=compiler_params,
        )(p, x2, w)

    return out.reshape(B, C, Lo)


# ---------------------------------------------------------------------------
# Pure-JAX reference (mirrors F.avg_pool1d(clamp(x,eps)**p, K)**(1/p))
# ---------------------------------------------------------------------------
def gem_reference(x, p, *, kernel_size=8, eps=1e-6):
    B, C, L = x.shape
    K = kernel_size
    Lo = L // K
    pv = p[0] if hasattr(p, "shape") else jnp.float32(p)
    xc = jnp.maximum(x[..., : Lo * K], eps)
    xp = jnp.power(xc, pv)
    pooled = jnp.mean(xp.reshape(B, C, Lo, K), axis=-1)
    return jnp.power(pooled, 1.0 / pv)


if __name__ == "__main__":
    key = jax.random.PRNGKey(0)
    B, C, L = 2, 4, 16
    kernel_size = 8

    x = jax.random.normal(key, (B, C, L), dtype=jnp.float32)
    p_param = jnp.ones((1,), dtype=jnp.float32) * 3.0   # nn.Parameter(torch.ones(1) * 3)

    # Traced-p path (matches the module: p is a learned parameter).
    out_traced = jax.block_until_ready(gem_pallas(x, p_param, kernel_size=kernel_size, eps=1e-6))
    # Static-p fast path (p known at compile time -> VPU multiplies).
    out_static = jax.block_until_ready(gem_pallas(x, 3.0, kernel_size=kernel_size, eps=1e-6))

    ref = gem_reference(x, p_param, kernel_size=kernel_size, eps=1e-6)

    assert out_traced.shape == (B, C, L // kernel_size), out_traced.shape
    assert jnp.allclose(out_traced, ref, atol=1e-5, rtol=1e-5), (out_traced, ref)
    assert jnp.allclose(out_static, ref, atol=1e-5, rtol=1e-5), (out_static, ref)

    print("KERNEL_OK")
</pallas_src>

<mosaic_0001>
module attributes {stable_mosaic.version = 11 : i64} {
  func.func @_gem_kernel_traced_p(%arg0: i32, %arg1: memref<1xf32, #tpu.memory_space<smem>>, %arg2: memref<8x16xf32, #tpu.memory_space<vmem>>, %arg3: memref<16x2xf32, #tpu.memory_space<vmem>>, %arg4: memref<8x2xf32, #tpu.memory_space<vmem>>) attributes {dimension_semantics = [#tpu.dimension_semantics<parallel>], iteration_bounds = array<i64: 1>, scalar_prefetch = 0 : i64, scratch_operands = 0 : i64, tpu.core_type = #tpu.core_type<tc>, window_params = [{transform_indices = @transform_0, window_bounds = array<i64: 1>}, {transform_indices = @transform_1, window_bounds = array<i64: 8, 16>}, {pipeline_mode = #tpu.pipeline_mode<synchronous>, transform_indices = @transform_2, window_bounds = array<i64: 16, 2>}, {transform_indices = @transform_3, window_bounds = array<i64: 8, 2>}]} {
    %c0 = arith.constant 0 : index
    %0 = memref.load %arg1[%c0] : memref<1xf32, #tpu.memory_space<smem>>
    %c0_0 = arith.constant 0 : index
    %c0_1 = arith.constant 0 : index
    %1 = vector.load %arg2[%c0_0, %c0_1] : memref<8x16xf32, #tpu.memory_space<vmem>>, vector<8x16xf32>
    %cst = arith.constant 9.99999997E-7 : f32
    %2 = vector.broadcast %cst : f32 to vector<8x16xf32>
    %3 = arith.maximumf %1, %2 : vector<8x16xf32>
    %4 = vector.broadcast %0 : f32 to vector<8x16xf32>
    %5 = math.powf %3, %4 : vector<8x16xf32>
    %c0_2 = arith.constant 0 : index
    %c0_3 = arith.constant 0 : index
    %6 = vector.load %arg3[%c0_2, %c0_3] : memref<16x2xf32, #tpu.memory_space<vmem>>, vector<16x2xf32>
    %cst_4 = arith.constant dense<0.000000e+00> : vector<8x2xf32>
    %7 = tpu.matmul %5, %6, %cst_4 {dimension_numbers = #tpu.dot_dimension_numbers<[1], [0], [0], [1], [0, 0, 1, 1], [], []>} : vector<8x16xf32>, vector<16x2xf32>, vector<8x2xf32> -> vector<8x2xf32>
    %cst_5 = arith.constant 1.000000e+00 : f32
    %8 = arith.divf %cst_5, %0 : f32
    %9 = vector.broadcast %8 : f32 to vector<8x2xf32>
    %10 = math.powf %7, %9 : vector<8x2xf32>
    %c0_6 = arith.constant 0 : index
    %c0_7 = arith.constant 0 : index
    %11 = vector.load %arg4[%c0_6, %c0_7] : memref<8x2xf32, #tpu.memory_space<vmem>>, vector<8x2xf32>
    tpu.vector_store %arg4[%c0_6, %c0_7], %10 {strides = array<i32>} : memref<8x2xf32, #tpu.memory_space<vmem>>, vector<8x2xf32>,
    return
  }
  func.func @transform_0(%arg0: i32) -> i32 {
    %c0_i32 = arith.constant 0 : i32
    %c0_i32_0 = arith.constant 0 : i32
    return %c0_i32 : i32
  }
  func.func @transform_1(%arg0: i32) -> (i32, i32) {
    %c0_i32 = arith.constant 0 : i32
    %c0_i32_0 = arith.constant 0 : i32
    return %arg0, %c0_i32 : i32, i32
  }
  func.func @transform_2(%arg0: i32) -> (i32, i32) {
    %c0_i32 = arith.constant 0 : i32
    %c0_i32_0 = arith.constant 0 : i32
    %c0_i32_1 = arith.constant 0 : i32
    return %c0_i32, %c0_i32_0 : i32, i32
  }
  func.func @transform_3(%arg0: i32) -> (i32, i32) {
    %c0_i32 = arith.constant 0 : i32
    %c0_i32_0 = arith.constant 0 : i32
    return %arg0, %c0_i32 : i32, i32
  }
}

</mosaic_0001>

<bundles_post_ra>
// kernel: tpu_custom_call.1
= control target key start
LH: loop header
LB: loop body
LE: loop exit
PB: predicated region body
PF: predicated region fallthrough
CT: control target
= control target key end

     0   :  { %v283_v61 = vmov 2139095040   ;;  %s485_s2 = inlined_call_operand.vmem [shape: f32[16,2], index: 2, kind: input, shape index: {}]   ;;  %s486_s1 = inlined_call_operand.vmem [shape: f32[8,16], index: 1, kind: input, shape index: {}]   ;;  %s487_s0 = inlined_call_operand.<no memory space> [shape: f32[1], index: 0, kind: input, shape index: {}]   ;;  %s488_s3 = inlined_call_operand.vmem [shape: f32[8,2], index: 3, kind: output, shape index: {}]  }
   0x1   :  { %v21_v0 = vld [vmem:[%s485_s2 + $0x8] sm:$0xff]  ;;  %v20_v1 = vld [vmem:[%s485_s2] sm:$0xff]  ;;  %v325_v22 = vstv %s487_s0 }
   0x2   :  { %v16_v2 = vld [vmem:[%s486_s1] sm:$0xff]  ;;  %40 = vmatpush.msra.mxu0 %v21_v0  ;;  %v328_v28 = vand.u32 2147483647, %v325_v22  ;;  %v124_v34 = vceil.f32 %v325_v22  ;;  %v125_v35 = vfloor.f32 %v325_v22  ;;  %277 = vrcp.f32 %v325_v22 }
   0x3   :  { %v314_v3 = vmax.f32 %v16_v2, 1e-06  ;;  %vm123_vm1 = vcmp.lt.s32.totalorder %v325_v22, 0  ;;  %v58_v47 = vand.u32 2147483648, %v325_v22  ;;  %vm52_vm8 = vweird.f32 %v325_v22 }
   0x4   :  { %41 = vmatpush.msra.mxu0 %v20_v1  ;;  %v131_v36 = vfloor.f32 %v328_v28  ;;  %v126_v40 = vsel %vm123_vm1, %v124_v34, %v125_v35  ;;  %vm489_vm4 = vcmp.eq.f32.partialorder %v328_v28, 2139095040  ;;  %vm122_vm11 = vcmp.lt.f32.partialorder %v325_v22, 0 }
   0x5   :  { %v317_v4 = vand.u32 2147483647, %v314_v3  ;;  %vm127_vm5 = vcmp.ne.f32.partialorder %v325_v22, %v126_v40  ;;  %vm139_vm12 = vcmp.eq.f32.partialorder %v314_v3, 0  ;;  %v59_v56 = vor.u32 1.1754944e-38, %v58_v47 }
   0x6   :  { %v132_v41 = vcvt.f32.s32 %v131_v36  ;;  %vm348_vm10 = vmor %vm127_vm5, %vm489_vm4  ;;  %vm57_vm1 = vcmp.eq.f32.partialorder %v328_v28, 8.507059e+37  ;;  %v158_v62 = vsel %vm122_vm11, 0, %v283_v61  ;;  %vm141_vm4 = vcmp.lt.s32.totalorder %v314_v3, 0 }
   0x7   :  { %v77_v5 = vand.u32 8388607, %v317_v4  ;;  %v73_v11 = vand.u32 2139095040, %v317_v4  ;;  %vm110_vm2 = vcmp.lt.f32.partialorder %v317_v4, 0.0  ;;  %vm111_vm3 = vweird.f32 %v317_v4 }
   0x8   :  { %v278_v43 = vpop.eup %277  ;;  %vm108_vm6 = vcmp.eq.f32.partialorder %v317_v4, 1.0  ;;  %vm109_vm7 = vcmp.eq.f32.partialorder %v317_v4, 0.0  ;;  %v133_v46 = vand.u32 1, %v132_v41  ;;  %vm142_vm13 = vcmp.gt.f32.partialorder %v317_v4, 1065353216 }
   0x9   :  { %v78_v6 = vor.u32 8388608, %v77_v5  ;;  %v74_v14 = vshrl.u32 %v73_v11, 23  ;;  %v48_v45 = vmul.f32 %v278_v43, %v325_v22  ;;  %vm53_vm9 = vweird.f32 %v278_v43  ;;  %vm374_vm5 = vmxor %vm122_vm11, %vm142_vm13 }
   0xa   :  { %vm355_vm14 = vmor %vm52_vm8, %vm53_vm9  ;;  %vm134_vm15 = vcmp.eq.s32.totalorder %v133_v46, 1  ;;  %v159_v1 = vxor.u32 2147483648, %v158_v62  ;;  %v284_v2 = vmov 0  }
   0xb   :  { %v80_v7 = vand.u32 8388607, %v78_v6  ;;  %v170_v19 = vadd.s32 4294967169, %v74_v14  ;;  %v49_v49 = vsub.f32 1.0, %v48_v45  ;;  %v146_v5 = vsel %vm122_vm11, 2139095040, %v284_v2 }
   0xd   :  { %v81_v8 = vor.u32 1065353216, %v80_v7  ;;  %v85_v25 = vadd.s32 1, %v170_v19  ;;  %v50_v53 = vmul.f32 %v278_v43, %v49_v49 }
   0xf   :  { %vm82_vm0 = vcmp.ge.f32.partialorder %v81_v8, 1.4142135  ;;  %v83_v9 = vmul.f32 0.5, %v81_v8  ;;  %v51_v58 = vadd.f32 %v278_v43, %v50_v53 }
  0x10   :  { %v86_v31 = vsel %vm82_vm0, %v85_v25, %v170_v19 }
  0x11   :  { %v84_v10 = vsel %vm82_vm0, %v83_v9, %v81_v8  ;;  %v106_v39 = vcvt.s32.f32 %v86_v31  ;;  %vm135_vm0 = vmneg %vm348_vm10  ;;  %v55_v63 = vsel %vm355_vm14, %v278_v43, %v51_v58 }
  0x12   :  { %v171_v12 = vadd.f32 -1.0, %v84_v10  ;;  %v60_v0 = vsel %vm57_vm1, %v59_v56, %v55_v63  ;;  %vm120_vm1 = vcmp.eq.f32.partialorder %v325_v22, 0 }
  0x13   :  { %172 = vpush %v60_v0 }
  0x14   :  { %v88_v13 = vmul.f32 %v171_v12, %v171_v12 }
  0x16   :  { %v89_v15 = vmul.f32 0.12621109, %v88_v13  ;;  %v91_v16 = vmul.f32 -0.20706727, %v88_v13 }
  0x18   :  { %v90_v17 = vadd.f32 0.21545328, %v89_v15  ;;  %v92_v18 = vadd.f32 -0.23896284, %v91_v16 }
  0x1a   :  { %v93_v20 = vmul.f32 %v90_v17, %v88_v13  ;;  %v95_v21 = vmul.f32 %v92_v18, %v88_v13 }
  0x1c   :  { %v94_v23 = vadd.f32 0.28795174, %v93_v20  ;;  %v96_v24 = vadd.f32 -0.3607037, %v95_v21 }
  0x1e   :  { %v97_v26 = vmul.f32 %v94_v23, %v88_v13  ;;  %v99_v27 = vmul.f32 %v96_v24, %v88_v13 }
  0x20   :  { %v98_v29 = vadd.f32 0.48090908, %v97_v26  ;;  %v100_v30 = vadd.f32 -0.72134733, %v99_v27 }
  0x22   :  { %v101_v32 = vmul.f32 %v98_v29, %v88_v13  ;;  %v103_v33 = vmul.f32 %v171_v12, %v100_v30 }
  0x24   :  { %v102_v37 = vadd.f32 1.442695, %v101_v32 }
  0x26   :  { %v104_v38 = vadd.f32 %v103_v33, %v102_v37 }
  0x28   :  { %v105_v42 = vmul.f32 %v171_v12, %v104_v38 }
  0x2a   :  { %v107_v44 = vadd.f32 %v106_v39, %v105_v42 }
  0x2c   :  { %v112_v48 = vsel %vm111_vm3, %v317_v4, %v107_v44  ;;  %vm368_vm3 = vmand %vm122_vm11, %vm139_vm12  ;;  %vm140_vm11 = vcmp.eq.f32.partialorder %v314_v3, 1065353216 }
  0x2d   :  { %v113_v50 = vsel %vm110_vm2, nan, %v112_v48  ;;  %vm138_vm2 = vcmp.lt.f32.partialorder %v314_v3, 0  ;;  %vm153_vm9 = vmor %vm368_vm3, %vm374_vm5  ;;  %vm143_vm3 = vcmp.eq.f32.partialorder %v317_v4, 2139095040 }
  0x2e   :  { %v114_v52 = vsel %vm109_vm7, -inf, %v113_v50  ;;  %vm136_vm7 = vmand %vm134_vm15, %vm135_vm0  ;;  %v154_v7 = vsel %vm153_vm9, 2139095040, %v284_v2  ;;  %vm163_vm15 = vcmp.ne.f32.partialorder %v314_v3, %v314_v3  ;;  %vm164_vm0 = vcmp.ne.f32.partialorder %v325_v22, %v325_v22 }
  0x2f   :  { %v115_v54 = vsel %vm108_vm6, 0.0, %v114_v52  ;;  %vm129_vm6 = vcmp.lt.f32.partialorder %v328_v28, 1266679808  ;;  %vm144_vm8 = vmand %vm138_vm2, %vm348_vm10  ;;  %vm155_vm10 = vcmp.eq.f32.partialorder %v314_v3, 3212836864 }
  0x30   :  { %v116_v57 = vmul.f32 %v115_v54, %v325_v22  ;;  %vm137_vm13 = vmand %vm129_vm6, %vm136_vm7  ;;  %v156_v12 = vsel %vm155_vm10, 1065353216, %v154_v7  ;;  %vm121_vm6 = vcmp.eq.f32.partialorder %v325_v22, 1065353216  ;;  %vm22_vm7 = vcmask 130048  }
  0x31   :  { %v160_v9 = vsel %vm137_vm13, %v159_v1, %v158_v62  ;;  %vm148_vm14 = vmand %vm141_vm4, %vm137_vm13  ;;  %vm498_vm4 = vcmp.eq.f32.partialorder %v328_v28, 2139095040 }
  0x32   :  { %279 = vpow2.f32 %v116_v57  ;;  %v161_v13 = vsel %vm138_vm2, %v160_v9, %v158_v62  ;;  %vm167_vm5 = vmor %vm140_vm11, %vm120_vm1 }
  0x38   :  { %v280_v6 = vpop.eup %279 }
  0x39   :  { %v145_v8 = vsel %vm144_vm8, 2143289344, %v280_v6 }
  0x3a   :  { %v147_v10 = vsel %vm139_vm12, %v146_v5, %v145_v8  ;;  %vm165_vm12 = vmor %vm163_vm15, %vm164_vm0 }
  0x3b   :  { %v149_v11 = vxor.u32 2147483648, %v147_v10 }
  0x3d   :  { %v150_v14 = vsel %vm148_vm14, %v149_v11, %v147_v10 }
  0x3e   :  { %v157_v15 = vsel %vm498_vm4, %v156_v12, %v150_v14 }
  0x3f   :  { %v162_v16 = vsel %vm143_vm3, %v161_v13, %v157_v15 }
  0x40   :  { %v166_v17 = vsel %vm165_vm12, 2143289344, %v162_v16 }
  0x41   :  { %v168_v18 = vsel %vm167_vm5, 1065353216, %v166_v17 }
  0x42   :  { %v169_v19 = vsel %vm121_vm6, %v314_v3, %v168_v18 }
  0x43   :  { %70 = vmatmul.msk.f32.vlgmr.msra.gmra.mxu0 %vm22_vm7, %v169_v19 }
  0x44   :  { %s173_s0 = spop %172 }
  0x45   :  { %v421_v36 = vstv %s173_s0 }
  0x46   :  { %v424_v42 = vand.u32 2147483647, %v421_v36  ;;  %v227_v47 = vceil.f32 %v421_v36  ;;  %v228_v48 = vfloor.f32 %v421_v36  ;;  %vm226_vm8 = vcmp.lt.s32.totalorder %v421_v36, 0 }
  0x47   :  { %vm225_vm12 = vcmp.lt.f32.partialorder %v421_v36, 0 }
  0x48   :  { %v234_v49 = vfloor.f32 %v424_v42  ;;  %v229_v54 = vsel %vm226_vm8, %v227_v47, %v228_v48  ;;  %vm222_vm9 = vcmp.eq.f32.partialorder %v424_v42, 2139095040  ;;  %vm232_vm5 = vcmp.lt.f32.partialorder %v424_v42, 1266679808 }
  0x49   :  { %vm230_vm13 = vcmp.ne.f32.partialorder %v421_v36, %v229_v54  ;;  %v261_v6 = vsel %vm225_vm12, 0, %v283_v61  ;;  %v249_v61 = vsel %vm225_vm12, 2139095040, %v284_v2 }
  0x4a   :  { %v235_v55 = vcvt.f32.s32 %v234_v49  ;;  %vm438_vm15 = vmor %vm230_vm13, %vm222_vm9  ;;  %v262_v7 = vxor.u32 2147483648, %v261_v6 }
  0x4b   :  { %vm238_vm3 = vmneg %vm438_vm15 }
  0x4c   :  { %v236_v59 = vand.u32 1, %v235_v55 }
  0x4e   :  { %vm237_vm11 = vcmp.eq.s32.totalorder %v236_v59, 1 }
  0x4f   :  { %vm239_vm6 = vmand %vm237_vm11, %vm238_vm3 }
  0x50   :  { %vm240_vm8 = vmand %vm232_vm5, %vm239_vm6  ;;  %vm223_vm5 = vcmp.eq.f32.partialorder %v421_v36, 0 }
  0x51   :  { %v263_v13 = vsel %vm240_vm8, %v262_v7, %v261_v6 }
  0xc0   :  { %v413_v20 = vpop.f32.mrf.mxu0 }
  0xc1   :  { %v416_v4 = vand.u32 2147483647, %v413_v20  ;;  %vm242_vm7 = vcmp.eq.f32.partialorder %v413_v20, 0  ;;  %vm241_vm13 = vcmp.lt.f32.partialorder %v413_v20, 0  ;;  %vm258_vm3 = vcmp.eq.f32.partialorder %v413_v20, 3212836864 }
  0xc2   :  { %vm243_vm6 = vcmp.eq.f32.partialorder %v413_v20, 1065353216  ;;  %v264_v16 = vsel %vm241_vm13, %v263_v13, %v261_v6 }
  0xc3   :  { %v180_v21 = vand.u32 8388607, %v416_v4  ;;  %v176_v29 = vand.u32 2139095040, %v416_v4  ;;  %vm214_vm10 = vweird.f32 %v416_v4  ;;  %vm213_vm14 = vcmp.lt.f32.partialorder %v416_v4, 0.0 }
  0xc4   :  { %vm212_vm0 = vcmp.eq.f32.partialorder %v416_v4, 0.0  ;;  %vm211_vm1 = vcmp.eq.f32.partialorder %v416_v4, 1.0  ;;  %vm245_vm4 = vcmp.gt.f32.partialorder %v416_v4, 1065353216 }
  0xc5   :  { %v181_v23 = vor.u32 8388608, %v180_v21  ;;  %v177_v33 = vshrl.u32 %v176_v29, 23 }
  0xc7   :  { %v183_v24 = vand.u32 8388607, %v181_v23  ;;  %v273_v39 = vadd.s32 4294967169, %v177_v33 }
  0xc9   :  { %v184_v25 = vor.u32 1065353216, %v183_v24  ;;  %v188_v45 = vadd.s32 1, %v273_v39 }
  0xcb   :  { %vm185_vm2 = vcmp.ge.f32.partialorder %v184_v25, 1.4142135  ;;  %v186_v26 = vmul.f32 0.5, %v184_v25 }
  0xcc   :  { %v189_v52 = vsel %vm185_vm2, %v188_v45, %v273_v39 }
  0xcd   :  { %v187_v22 = vsel %vm185_vm2, %v186_v26, %v184_v25  ;;  %v209_v57 = vcvt.s32.f32 %v189_v52  ;;  %vm255_vm2 = vmxor %vm225_vm12, %vm245_vm4  ;;  %vm266_vm4 = vcmp.ne.f32.partialorder %v413_v20, %v413_v20 }
  0xce   :  { %v274_v27 = vadd.f32 -1.0, %v187_v22 }
  0xd0   :  { %v191_v28 = vmul.f32 %v274_v27, %v274_v27 }
  0xd2   :  { %v192_v3 = vmul.f32 0.12621109, %v191_v28  ;;  %v194_v30 = vmul.f32 -0.20706727, %v191_v28 }
  0xd4   :  { %v193_v31 = vadd.f32 0.21545328, %v192_v3  ;;  %v195_v32 = vadd.f32 -0.23896284, %v194_v30 }
  0xd6   :  { %v196_v34 = vmul.f32 %v193_v31, %v191_v28  ;;  %v198_v35 = vmul.f32 %v195_v32, %v191_v28 }
  0xd8   :  { %v197_v37 = vadd.f32 0.28795174, %v196_v34  ;;  %v199_v38 = vadd.f32 -0.3607037, %v198_v35 }
  0xda   :  { %v200_v40 = vmul.f32 %v197_v37, %v191_v28  ;;  %v202_v41 = vmul.f32 %v199_v38, %v191_v28 }
  0xdc   :  { %v201_v43 = vadd.f32 0.48090908, %v200_v40  ;;  %v203_v44 = vadd.f32 -0.72134733, %v202_v41 }
  0xde   :  { %v204_v46 = vmul.f32 %v201_v43, %v191_v28  ;;  %v206_v51 = vmul.f32 %v274_v27, %v203_v44 }
  0xe0   :  { %v205_v50 = vadd.f32 1.442695, %v204_v46 }
  0xe2   :  { %v207_v53 = vadd.f32 %v206_v51, %v205_v50 }
  0xe4   :  { %v208_v56 = vmul.f32 %v274_v27, %v207_v53 }
  0xe6   :  { %v210_v58 = vadd.f32 %v209_v57, %v208_v56 }
  0xe8   :  { %v215_v60 = vsel %vm214_vm10, %v416_v4, %v210_v58  ;;  %vm254_vm10 = vmand %vm225_vm12, %vm242_vm7  ;;  %vm246_vm12 = vcmp.eq.f32.partialorder %v416_v4, 2139095040 }
  0xe9   :  { %v216_v63 = vsel %vm213_vm14, nan, %v215_v60  ;;  %vm256_vm14 = vmor %vm254_vm10, %vm255_vm2  ;;  %vm224_vm10 = vcmp.eq.f32.partialorder %v421_v36, 1065353216 }
  0xea   :  { %v217_v0 = vsel %vm212_vm0, -inf, %v216_v63  ;;  %vm247_vm0 = vmand %vm241_vm13, %vm438_vm15  ;;  %v257_v11 = vsel %vm256_vm14, 2139095040, %v284_v2  ;;  %vm267_vm15 = vcmp.ne.f32.partialorder %v421_v36, %v421_v36 }
  0xeb   :  { %v218_v1 = vsel %vm211_vm1, 0.0, %v217_v0  ;;  %vm244_vm1 = vcmp.lt.s32.totalorder %v413_v20, 0  ;;  %v259_v15 = vsel %vm258_vm3, 1065353216, %v257_v11  ;;  %vm270_vm2 = vmor %vm243_vm6, %vm223_vm5 }
  0xec   :  { %v219_v5 = vmul.f32 %v218_v1, %v421_v36  ;;  %vm251_vm11 = vmand %vm244_vm1, %vm240_vm8  ;;  %vm64_vm8 = vcmask 15360  }
  0xee   :  { %281 = vpow2.f32 %v219_v5 }
  0xf4   :  { %v282_v8 = vpop.eup %281 }
  0xf5   :  { %v248_v9 = vsel %vm247_vm0, 2143289344, %v282_v8 }
  0xf6   :  { %v250_v10 = vsel %vm242_vm7, %v249_v61, %v248_v9  ;;  %vm268_vm7 = vmor %vm266_vm4, %vm267_vm15 }
  0xf7   :  { %v252_v12 = vxor.u32 2147483648, %v250_v10 }
  0xf9   :  { %v253_v14 = vsel %vm251_vm11, %v252_v12, %v250_v10 }
  0xfa   :  { %v260_v2 = vsel %vm222_vm9, %v259_v15, %v253_v14 }
  0xfb   :  { %v265_v17 = vsel %vm246_vm12, %v264_v16, %v260_v2 }
  0xfc   :  { %v269_v18 = vsel %vm268_vm7, 2143289344, %v265_v17 }
  0xfd   :  { %v271_v19 = vsel %vm270_vm2, 1065353216, %v269_v18 }
  0xfe   :  { %v272_v21 = vsel %vm224_vm10, %v413_v20, %v271_v19 }
  0xff   :  { %65 = vst.msk [vmem:[%s488_s3] sm:$0xff] %vm64_vm8, %v272_v21 }

</bundles_post_ra>
